<compile_context>
chip_gen: v7x
topology: tpu7x:2x2x1
jax: 0.10.0
libtpu: 0.0.40
codegen_flags: <defaults>
</compile_context>

<pallas_src>
import functools

import jax
import jax.numpy as jnp
from jax.experimental import pallas as pl
from jax.experimental.pallas import tpu as pltpu


def _silu(x):
    # sigmoid(x) = 0.5 * (1 + tanh(x/2))  -> silu(x) = 0.5 * x * (1 + tanh(x/2)).
    # One EUP transcendental per element; the extra mul/add rides the idle VALU.
    return 0.5 * x * (1.0 + jnp.tanh(0.5 * x))


def mlp_score_kernel(xin_ref, w1_ref, b1_ref, w2_ref, b2_ref, w3_ref, b3_ref,
                     o_ref):
    """Feature-major MLP forward for one batch tile (batch on the 128-lane axis).

    Shapes (bm = batch tile):
      xin_ref: (dim+1, bm) f32   -- rows are [x_0 .. x_{dim-1}, t]
      w1_ref:  (h1, dim+1) f32   b1_ref: (h1, 1) f32
      w2_ref:  (h2, h1)   bf16   b2_ref: (h2, 1) f32
      w3_ref:  (dim, h2)  bf16   b3_ref: (dim, 1) f32
      o_ref:   (dim, bm)
    """
    # ---- Layer 1: Linear(dim+1 -> h1) as a tiny-K MXU dot (f32 operands,
    # exact; the compiler pads K internally and the MXU is otherwise idle).
    h = jnp.dot(w1_ref[...], xin_ref[...],
                preferred_element_type=jnp.float32) + b1_ref[...]
    h = _silu(h)

    # ---- Layer 2: Linear(h1 -> h2).  bf16 MXU operands, f32 accumulation.
    h = jnp.dot(w2_ref[...], h.astype(jnp.bfloat16),
                preferred_element_type=jnp.float32) + b2_ref[...]
    h = _silu(h)

    # ---- Output layer: Linear(h2 -> dim), no activation.  Lane-dense store.
    out = jnp.dot(w3_ref[...], h.astype(jnp.bfloat16),
                  preferred_element_type=jnp.float32) + b3_ref[...]
    o_ref[...] = out.astype(o_ref.dtype)


def _round_up(n, m):
    return ((n + m - 1) // m) * m


@functools.partial(jax.jit, static_argnames=("block_batch",))
def mlp_score(x, t, params, *, block_batch=8192):
    """MLPScore.forward: returns s_theta(x, t) of shape (bs, dim).

    params: (w1, b1, w2, b2, w3, b3) in PyTorch nn.Linear layout
            (W: (out, in), b: (out,)).
    """
    bs, dim = x.shape
    w1, b1, w2, b2, w3, b3 = params
    h1 = w1.shape[0]
    h2 = w2.shape[0]

    # ---- Batch tile selection -------------------------------------------------
    # Large, lane-aligned tiles amortize per-step pipeline overhead; capping at
    # ceil(bs/2) keeps >= 2 grid steps so the "parallel" axis can shard across
    # both TensorCores on v7x.  Tiny batches use a single full-array tile
    # (cannot split below 128 lanes).
    if bs < 256:
        bm = bs
    else:
        bm = max(128, (min(block_batch, bs) // 128) * 128)
        bm = min(bm, _round_up(pl.cdiv(bs, 2), 128))
    grid = (pl.cdiv(bs, bm),)

    # ---- Wrapper-side layout plumbing (kept to one copy each way) -------------
    # TODO(synk): if the surrounding sampler keeps activations feature-major
    # (dim, bs) end-to-end these two copies disappear entirely.
    xinT = jnp.concatenate([x, t.reshape(bs, 1)], axis=-1).T        # (dim+1, bs)

    w2b = w2.astype(jnp.bfloat16)
    w3b = w3.astype(jnp.bfloat16)
    b1c = b1.reshape(h1, 1)
    b2c = b2.reshape(h2, 1)
    b3c = b3.reshape(dim, 1)

    full = lambda a: pl.BlockSpec(a.shape, lambda i: (0, 0))        # replicated

    oT = pl.pallas_call(
        mlp_score_kernel,
        out_shape=jax.ShapeDtypeStruct((dim, bs), x.dtype),
        grid_spec=pltpu.PrefetchScalarGridSpec(
            num_scalar_prefetch=0,
            grid=grid,
            in_specs=[
                pl.BlockSpec((dim + 1, bm), lambda i: (0, i)),      # stacked [x; t]
                full(w1), full(b1c),
                full(w2b), full(b2c),
                full(w3b), full(b3c),
            ],
            out_specs=pl.BlockSpec((dim, bm), lambda i: (0, i)),
        ),
        compiler_params=pltpu.CompilerParams(
            dimension_semantics=("parallel",),          # megacore split on v7x
            vmem_limit_bytes=48 * 1024 * 1024,          # headroom for big tiles on v5e
        ),
    )(xinT, w1, b1c, w2b, b2c, w3b, b3c)

    return oT.T                                         # back to (bs, dim)


def init_params(key, dim, hiddens):
    """PyTorch-style Linear init: W (out, in), b (out,), U(-1/sqrt(fan_in), ...)."""
    dims = [dim + 1] + list(hiddens) + [dim]
    params = []
    for d_in, d_out in zip(dims[:-1], dims[1:]):
        key, kw, kb = jax.random.split(key, 3)
        bound = 1.0 / jnp.sqrt(d_in)
        w = jax.random.uniform(kw, (d_out, d_in), jnp.float32, -bound, bound)
        b = jax.random.uniform(kb, (d_out,), jnp.float32, -bound, bound)
        params.extend([w, b])
    return tuple(params)


def mlp_score_reference(x, t, params):
    """Pure-JAX reference (exact SiLU, f32 matmuls) for the correctness check."""
    w1, b1, w2, b2, w3, b3 = params
    h = jnp.concatenate([x, t], axis=-1)
    h = jax.nn.silu(h @ w1.T + b1)
    h = jax.nn.silu(h @ w2.T + b2)
    return h @ w3.T + b3


if __name__ == "__main__":
    dim = 2
    hiddens = [32, 32]

    key = jax.random.PRNGKey(0)
    k_x, k_t, k_p = jax.random.split(key, 3)
    params = init_params(k_p, dim, hiddens)

    # Tolerance accounts for bf16 MXU operands in layers 2-3 (f32 accumulation,
    # exact tanh-form SiLU) vs. the all-f32 reference.
    TOL = dict(atol=3e-2, rtol=3e-2)

    # 1) Tiny batch: single full-array tile.
    bs = 8
    x = jax.random.normal(k_x, (bs, dim), jnp.float32)
    t = jax.random.uniform(k_t, (bs, 1), jnp.float32)
    out = jax.block_until_ready(mlp_score(x, t, params))
    ref = mlp_score_reference(x, t, params)
    assert out.shape == (bs, dim)
    assert jnp.allclose(out, ref, **TOL), "mismatch vs reference (bs=8)"

    # 2) bs > block_batch and bs not a multiple of the tile: exercises the
    #    padded / masked last grid step and the >=2-step megacore split.
    bs2 = 1100
    k_x2, k_t2 = jax.random.split(jax.random.PRNGKey(1))
    x2 = jax.random.normal(k_x2, (bs2, dim), jnp.float32)
    t2 = jax.random.uniform(k_t2, (bs2, 1), jnp.float32)
    out2 = jax.block_until_ready(mlp_score(x2, t2, params, block_batch=1024))
    ref2 = mlp_score_reference(x2, t2, params)
    assert out2.shape == (bs2, dim)
    assert jnp.allclose(out2, ref2, **TOL), "mismatch vs reference (bs=1100)"

    # 3) Multi-step grid with lane-dense 128-multiple tiles.
    bs3 = 4096
    k_x3, k_t3 = jax.random.split(jax.random.PRNGKey(2))
    x3 = jax.random.normal(k_x3, (bs3, dim), jnp.float32)
    t3 = jax.random.uniform(k_t3, (bs3, 1), jnp.float32)
    out3 = jax.block_until_ready(mlp_score(x3, t3, params, block_batch=512))
    ref3 = mlp_score_reference(x3, t3, params)
    assert out3.shape == (bs3, dim)
    assert jnp.allclose(out3, ref3, **TOL), "mismatch vs reference (bs=4096)"

    print("KERNEL_OK")
</pallas_src>

<mosaic_0001>
module attributes {stable_mosaic.version = 11 : i64} {
  func.func @mlp_score_kernel(%arg0: i32, %arg1: memref<3x8xf32, #tpu.memory_space<vmem>>, %arg2: memref<32x3xf32, #tpu.memory_space<vmem>>, %arg3: memref<32x1xf32, #tpu.memory_space<vmem>>, %arg4: memref<32x32xbf16, #tpu.memory_space<vmem>>, %arg5: memref<32x1xf32, #tpu.memory_space<vmem>>, %arg6: memref<2x32xbf16, #tpu.memory_space<vmem>>, %arg7: memref<2x1xf32, #tpu.memory_space<vmem>>, %arg8: memref<2x8xf32, #tpu.memory_space<vmem>>) attributes {dimension_semantics = [#tpu.dimension_semantics<parallel>], iteration_bounds = array<i64: 1>, scalar_prefetch = 0 : i64, scratch_operands = 0 : i64, tpu.core_type = #tpu.core_type<tc>, window_params = [{transform_indices = @transform_0, window_bounds = array<i64: 3, 8>}, {pipeline_mode = #tpu.pipeline_mode<synchronous>, transform_indices = @transform_1, window_bounds = array<i64: 32, 3>}, {pipeline_mode = #tpu.pipeline_mode<synchronous>, transform_indices = @transform_2, window_bounds = array<i64: 32, 1>}, {pipeline_mode = #tpu.pipeline_mode<synchronous>, transform_indices = @transform_3, window_bounds = array<i64: 32, 32>}, {pipeline_mode = #tpu.pipeline_mode<synchronous>, transform_indices = @transform_4, window_bounds = array<i64: 32, 1>}, {pipeline_mode = #tpu.pipeline_mode<synchronous>, transform_indices = @transform_5, window_bounds = array<i64: 2, 32>}, {pipeline_mode = #tpu.pipeline_mode<synchronous>, transform_indices = @transform_6, window_bounds = array<i64: 2, 1>}, {transform_indices = @transform_7, window_bounds = array<i64: 2, 8>}]} {
    %c0 = arith.constant 0 : index
    %c0_0 = arith.constant 0 : index
    %0 = vector.load %arg2[%c0, %c0_0] : memref<32x3xf32, #tpu.memory_space<vmem>>, vector<32x3xf32>
    %c0_1 = arith.constant 0 : index
    %c0_2 = arith.constant 0 : index
    %1 = vector.load %arg1[%c0_1, %c0_2] : memref<3x8xf32, #tpu.memory_space<vmem>>, vector<3x8xf32>
    %cst = arith.constant dense<0.000000e+00> : vector<32x8xf32>
    %2 = tpu.matmul %0, %1, %cst {dimension_numbers = #tpu.dot_dimension_numbers<[1], [0], [0], [1], [0, 0, 1, 1], [], []>} : vector<32x3xf32>, vector<3x8xf32>, vector<32x8xf32> -> vector<32x8xf32>
    %c0_3 = arith.constant 0 : index
    %c0_4 = arith.constant 0 : index
    %3 = vector.load %arg3[%c0_3, %c0_4] : memref<32x1xf32, #tpu.memory_space<vmem>>, vector<32x1xf32>
    %4 = vector.broadcast %3 : vector<32x1xf32> to vector<32x8xf32>
    %5 = arith.addf %2, %4 : vector<32x8xf32>
    %cst_5 = arith.constant 5.000000e-01 : f32
    %6 = vector.broadcast %cst_5 : f32 to vector<32x8xf32>
    %7 = arith.mulf %6, %5 : vector<32x8xf32>
    %cst_6 = arith.constant 5.000000e-01 : f32
    %8 = vector.broadcast %cst_6 : f32 to vector<32x8xf32>
    %9 = arith.mulf %8, %5 : vector<32x8xf32>
    %10 = math.tanh %9 : vector<32x8xf32>
    %cst_7 = arith.constant 1.000000e+00 : f32
    %11 = vector.broadcast %cst_7 : f32 to vector<32x8xf32>
    %12 = arith.addf %11, %10 : vector<32x8xf32>
    %13 = arith.mulf %7, %12 : vector<32x8xf32>
    %c0_8 = arith.constant 0 : index
    %c0_9 = arith.constant 0 : index
    %14 = vector.load %arg4[%c0_8, %c0_9] : memref<32x32xbf16, #tpu.memory_space<vmem>>, vector<32x32xbf16>
    %15 = arith.truncf %13 : vector<32x8xf32> to vector<32x8xbf16>
    %cst_10 = arith.constant dense<0.000000e+00> : vector<32x8xf32>
    %16 = tpu.matmul %14, %15, %cst_10 {dimension_numbers = #tpu.dot_dimension_numbers<[1], [0], [0], [1], [0, 0, 1, 1], [], []>} : vector<32x32xbf16>, vector<32x8xbf16>, vector<32x8xf32> -> vector<32x8xf32>
    %c0_11 = arith.constant 0 : index
    %c0_12 = arith.constant 0 : index
    %17 = vector.load %arg5[%c0_11, %c0_12] : memref<32x1xf32, #tpu.memory_space<vmem>>, vector<32x1xf32>
    %18 = vector.broadcast %17 : vector<32x1xf32> to vector<32x8xf32>
    %19 = arith.addf %16, %18 : vector<32x8xf32>
    %cst_13 = arith.constant 5.000000e-01 : f32
    %20 = vector.broadcast %cst_13 : f32 to vector<32x8xf32>
    %21 = arith.mulf %20, %19 : vector<32x8xf32>
    %cst_14 = arith.constant 5.000000e-01 : f32
    %22 = vector.broadcast %cst_14 : f32 to vector<32x8xf32>
    %23 = arith.mulf %22, %19 : vector<32x8xf32>
    %24 = math.tanh %23 : vector<32x8xf32>
    %cst_15 = arith.constant 1.000000e+00 : f32
    %25 = vector.broadcast %cst_15 : f32 to vector<32x8xf32>
    %26 = arith.addf %25, %24 : vector<32x8xf32>
    %27 = arith.mulf %21, %26 : vector<32x8xf32>
    %c0_16 = arith.constant 0 : index
    %c0_17 = arith.constant 0 : index
    %28 = vector.load %arg6[%c0_16, %c0_17] : memref<2x32xbf16, #tpu.memory_space<vmem>>, vector<2x32xbf16>
    %29 = arith.truncf %27 : vector<32x8xf32> to vector<32x8xbf16>
    %cst_18 = arith.constant dense<0.000000e+00> : vector<2x8xf32>
    %30 = tpu.matmul %28, %29, %cst_18 {dimension_numbers = #tpu.dot_dimension_numbers<[1], [0], [0], [1], [0, 0, 1, 1], [], []>} : vector<2x32xbf16>, vector<32x8xbf16>, vector<2x8xf32> -> vector<2x8xf32>
    %c0_19 = arith.constant 0 : index
    %c0_20 = arith.constant 0 : index
    %31 = vector.load %arg7[%c0_19, %c0_20] : memref<2x1xf32, #tpu.memory_space<vmem>>, vector<2x1xf32>
    %32 = vector.broadcast %31 : vector<2x1xf32> to vector<2x8xf32>
    %33 = arith.addf %30, %32 : vector<2x8xf32>
    %c0_21 = arith.constant 0 : index
    %c0_22 = arith.constant 0 : index
    %34 = vector.load %arg8[%c0_21, %c0_22] : memref<2x8xf32, #tpu.memory_space<vmem>>, vector<2x8xf32>
    tpu.vector_store %arg8[%c0_21, %c0_22], %33 {strides = array<i32>} : memref<2x8xf32, #tpu.memory_space<vmem>>, vector<2x8xf32>,
    return
  }
  func.func @transform_0(%arg0: i32) -> (i32, i32) {
    %c0_i32 = arith.constant 0 : i32
    %c0_i32_0 = arith.constant 0 : i32
    return %c0_i32, %arg0 : i32, i32
  }
  func.func @transform_1(%arg0: i32) -> (i32, i32) {
    %c0_i32 = arith.constant 0 : i32
    %c0_i32_0 = arith.constant 0 : i32
    %c0_i32_1 = arith.constant 0 : i32
    return %c0_i32, %c0_i32_0 : i32, i32
  }
  func.func @transform_2(%arg0: i32) -> (i32, i32) {
    %c0_i32 = arith.constant 0 : i32
    %c0_i32_0 = arith.constant 0 : i32
    %c0_i32_1 = arith.constant 0 : i32
    return %c0_i32, %c0_i32_0 : i32, i32
  }
  func.func @transform_3(%arg0: i32) -> (i32, i32) {
    %c0_i32 = arith.constant 0 : i32
    %c0_i32_0 = arith.constant 0 : i32
    %c0_i32_1 = arith.constant 0 : i32
    return %c0_i32, %c0_i32_0 : i32, i32
  }
  func.func @transform_4(%arg0: i32) -> (i32, i32) {
    %c0_i32 = arith.constant 0 : i32
    %c0_i32_0 = arith.constant 0 : i32
    %c0_i32_1 = arith.constant 0 : i32
    return %c0_i32, %c0_i32_0 : i32, i32
  }
  func.func @transform_5(%arg0: i32) -> (i32, i32) {
    %c0_i32 = arith.constant 0 : i32
    %c0_i32_0 = arith.constant 0 : i32
    %c0_i32_1 = arith.constant 0 : i32
    return %c0_i32, %c0_i32_0 : i32, i32
  }
  func.func @transform_6(%arg0: i32) -> (i32, i32) {
    %c0_i32 = arith.constant 0 : i32
    %c0_i32_0 = arith.constant 0 : i32
    %c0_i32_1 = arith.constant 0 : i32
    return %c0_i32, %c0_i32_0 : i32, i32
  }
  func.func @transform_7(%arg0: i32) -> (i32, i32) {
    %c0_i32 = arith.constant 0 : i32
    %c0_i32_0 = arith.constant 0 : i32
    return %c0_i32, %arg0 : i32, i32
  }
}

</mosaic_0001>

<bundles_post_ra>
// kernel: mlp_score.1
= control target key start
LH: loop header
LB: loop body
LE: loop exit
PB: predicated region body
PF: predicated region fallthrough
CT: control target
= control target key end

     0   :  { %vm70_vm0 = vcmask 1042432   ;;  %vm57_vm1 = vcmask 23552   ;;  %v449_v5 = vmov 0   ;;  %s563_s0 = inlined_call_operand.vmem [shape: f32[3,8], index: 0, kind: input, shape index: {}]   ;;  %s564_s1 = inlined_call_operand.vmem [shape: f32[32,3], index: 1, kind: input, shape index: {}]   ;;  %s565_s2 = inlined_call_operand.vmem [shape: f32[32,1], index: 2, kind: input, shape index: {}]   ;;  %s566_s3 = inlined_call_operand.vmem [shape: bf16[32,32], index: 3, kind: input, shape index: {}]   ;;  %s567_s4 = inlined_call_operand.vmem [shape: f32[32,1], index: 4, kind: input, shape index: {}]   ;;  %s568_s5 = inlined_call_operand.vmem [shape: bf16[2,32], index: 5, kind: input, shape index: {}]   ;;  %s569_s6 = inlined_call_operand.vmem [shape: f32[2,1], index: 6, kind: input, shape index: {}]   ;;  %s570_s7 = inlined_call_operand.hbm [shape: f32[2,8], index: 7, kind: output, shape index: {}]  }
   0x1   :  { %v32_v0 = vld [vmem:[%s563_s0] sm:$0x7]  ;;  %v29_v2 = vld [vmem:[%s564_s1 + $0x8] sm:$0xff]  ;;  %v30_v3 = vld [vmem:[%s564_s1 + $0x10] sm:$0xff]  ;;  %405 = vset.pattern.permute.xlu0 %v449_v5  ;;  %406 = vset.pattern.permute.xlu1 %v449_v5 }
   0x2   :  { %v28_v1 = vld [vmem:[%s564_s1] sm:$0xff]  ;;  %377 = vmatprep.subr.msk.mxu0 %vm70_vm0, %v32_v0  ;;  %v35_v6 = vld [vmem:[%s565_s2 + $0x10] sm:$0xff]  ;;  %v31_v7 = vld [vmem:[%s564_s1 + $0x18] sm:$0xff] }
   0x3   :  { %379 = vmatprep.mubr.msk.f32.mxu0 %vm57_vm1, %v28_v1  ;;  %v33_v4 = vld [vmem:[%s565_s2] sm:$0xff]  ;;  %378 = vmatpush3.msk.msra.mxu0 %vm70_vm0, %v32_v0  ;;  %v34_v8 = vld [vmem:[%s565_s2 + $0x8] sm:$0xff]  ;;  %v36_v9 = vld [vmem:[%s565_s2 + $0x18] sm:$0xff] }
   0x4   :  { %380 = vmatmul.mubr.msk.f32.vlgmr.msra.gmra.mrb[0].mxu0 %vm57_vm1, %v29_v2  ;;  %39 = vperm.xlu0 %405, %v33_v4  }
   0x5   :  { %382 = vmatprep.mubr.msk.f32.mxu0 %vm57_vm1, %v30_v3  ;;  %49 = vperm.xlu1 %406, %v35_v6  }
   0x6   :  { %12 = vsyncpa [#allocation3], 0  ;;  %v181_v10 = vld [vmem:[%s567_s4] sm:$0xff]  ;;  %v182_v11 = vld [vmem:[%s567_s4 + $0x8] sm:$0xff]  ;;  %vm215_vm2 = vcmask 261120   ;;  %v450_v47 = vmov 0.0  }
   0x7   :  { %v183_v12 = vld [vmem:[%s567_s4 + $0x10] sm:$0xff]  ;;  %v184_v13 = vld [vmem:[%s567_s4 + $0x18] sm:$0xff]  ;;  %v290_v14 = vld [vmem:[%s569_s6] sm:$0x3]  ;;  %393 = vmatprep.subr.bf16.mxu0 %v450_v47  ;;  %vm451_vm3 = vmmov 0   ;;  %s452_s29 = smov [#allocation2]  }
   0x8   :  { %383 = vmatmul.mubr.msk.f32.gmra.mrb[2].mxu0 %vm57_vm1, %v31_v7  ;;  %44 = vperm.xlu0 %405, %v34_v8   ;;  %v407_v15 = vld [vmem:[%s566_s3] sm:$0xff]   ;;  %v408_v46 = vld [vmem:[%s566_s3 + $0x8] sm:$0xff]   ;;  %s347_s30 = sshll.u32 %s452_s29, 4  ;;  %vm339_vm4 = vcmask 58368   ;;  %s348_s30 = int_to_ptr.vmem [resolvable:$true] %s347_s30 }
   0x9   :  { %54 = vperm.xlu1 %406, %v36_v9   ;;  %389 = vmatprep.mubr.msk.bf16.mxu1 %vm215_vm2, %v407_v15  ;;  %s425_s8 = scalar_lea.vmem %s348_s30, 32  ;;  %p430_p1 = scmp.lt.s32.totalorder %s348_s30, %s348_s30 }
   0xa   :  { %397 = vmatprep.mubr.msk.bf16.mxu0 %vm451_vm3, %v450_v47  ;;  %p426_p0 = scmp.ne.s32.totalorder %s348_s30, %s425_s8  ;;  %p431_p2 = scmp.lt.s32.totalorder %s425_s8, %s425_s8 }
   0xc   :  { %187 = vperm.xlu0 %405, %v181_v10   ;;  %p432_p3 = por %p431_p2, %p430_p1 }
   0xd   :  { %192 = vperm.xlu1 %406, %v182_v11  }
   0xe   :  { %p433_p4 = pnand %p432_p3, %p426_p0 }
  0x10   :  { %197 = vperm.xlu0 %405, %v183_v12  }
  0x11   :  { %202 = vperm.xlu1 %406, %v184_v13  }
  0x14   :  { %293 = vperm.xlu0 %405, %v290_v14   ;;  %v287_v14 = vld [vmem:[%s568_s5] sm:$0x1] }
  0x83   :  { %v40_v16 = vpop.permute.xlu0 %39 }
  0x84   :  { %v50_v17 = vpop.permute.xlu1 %49 }
  0x87   :  { %v45_v18 = vpop.permute.xlu0 %44 }
  0x88   :  { %v55_v24 = vpop.permute.xlu1 %54 }
  0x8b   :  { %v188_v48 = vpop.permute.xlu0 %187 }
  0x8c   :  { %v193_v49 = vpop.permute.xlu1 %192 }
  0x8f   :  { %v198_v50 = vpop.permute.xlu0 %197 }
  0x90   :  { %v203_v54 = vpop.permute.xlu1 %202 }
  0x93   :  { %v294_v15 = vpop.permute.xlu0 %293 }
  0xd7   :  { %v381_v19 = vpop.f32.mrb[0].mxu0 }
  0xd8   :  { %v146_v20 = vadd.f32 %v381_v19, %v45_v18  ;;  %v140_v21 = vpop.f32.mrb[1].mxu0 }
  0xd9   :  { %v141_v22 = vadd.f32 %v140_v21, %v40_v16 }
  0xda   :  { %v160_v23 = vmul.f32 0.5, %v146_v20 }
  0xdb   :  { %v159_v25 = vmul.f32 0.5, %v141_v22  ;;  %v384_v26 = vpop.f32.mrb[2].mxu0 }
  0xdc   :  { %409 = vtanh.f32 %v160_v23  ;;  %v156_v27 = vadd.f32 %v384_v26, %v55_v24  ;;  %v150_v28 = vpop.f32.mrb[3].mxu0 }
  0xdd   :  { %411 = vtanh.f32 %v159_v25  ;;  %v151_v29 = vadd.f32 %v150_v28, %v50_v17 }
  0xde   :  { %v162_v30 = vmul.f32 0.5, %v156_v27 }
  0xdf   :  { %v161_v31 = vmul.f32 0.5, %v151_v29 }
  0xe0   :  { %413 = vtanh.f32 %v162_v30 }
  0xe1   :  { %415 = vtanh.f32 %v161_v31 }
  0xe6   :  { %v410_v32 = vpop.eup %409 }
  0xe7   :  { %v412_v33 = vpop.eup %411  ;;  %v168_v34 = vadd.f32 1.0, %v410_v32 }
  0xe8   :  { %v167_v35 = vadd.f32 1.0, %v412_v33 }
  0xe9   :  { %v172_v36 = vmul.f32 %v168_v34, %v160_v23 }
  0xea   :  { %v414_v37 = vpop.eup %413  ;;  %v171_v38 = vmul.f32 %v167_v35, %v159_v25 }
  0xeb   :  { %v416_v39 = vpop.eup %415  ;;  %v170_v40 = vadd.f32 1.0, %v414_v37 }
  0xec   :  { %v169_v41 = vadd.f32 1.0, %v416_v39  ;;  %v179_v42 = vpack.c.bf16 %v172_v36, %v171_v38 }
  0xed   :  { %v174_v43 = vmul.f32 %v170_v40, %v162_v30 }
  0xee   :  { %v173_v44 = vmul.f32 %v169_v41, %v161_v31  ;;  %385 = vmatprep.subr.bf16.mxu1 %v179_v42 }
  0xef   :  { %386 = vmatpush3.bf16.msra.mxu1 %v179_v42 }
  0xf0   :  { %v180_v45 = vpack.c.bf16 %v174_v43, %v173_v44 }
  0xf2   :  { %387 = vmatprep.subr.bf16.mxu1 %v180_v45 }
  0xf3   :  { %388 = vmatpush3.bf16.msra.mxu1 %v180_v45 }
  0xf6   :  { %390 = vmatmul.mubr.msk.bf16.vlgmr.msra.gmra.mrb[0].mxu1 %vm215_vm2, %v408_v46 }
 0x1c9   :  { %v391_v51 = vpop.f32.mrb[0].mxu1 }
 0x1ca   :  { %v265_v52 = vadd.f32 %v391_v51, %v198_v50  ;;  %v256_v53 = vpop.f32.mrb[1].mxu1 }
 0x1cb   :  { %v257_v55 = vadd.f32 %v256_v53, %v188_v48  ;;  %v392_v56 = vpop.f32.mrb[2].mxu1 }
 0x1cc   :  { %v273_v57 = vmul.f32 0.5, %v265_v52  ;;  %v268_v58 = vadd.f32 %v392_v56, %v203_v54  ;;  %v259_v59 = vpop.f32.mrb[3].mxu1 }
 0x1cd   :  { %v271_v60 = vmul.f32 0.5, %v257_v55  ;;  %v260_v61 = vadd.f32 %v259_v59, %v193_v49 }
 0x1ce   :  { %417 = vtanh.f32 %v273_v57  ;;  %v274_v62 = vmul.f32 0.5, %v268_v58 }
 0x1cf   :  { %419 = vtanh.f32 %v271_v60  ;;  %v272_v63 = vmul.f32 0.5, %v260_v61 }
 0x1d0   :  { %421 = vtanh.f32 %v274_v62 }
 0x1d1   :  { %423 = vtanh.f32 %v272_v63 }
 0x1d8   :  { %v418_v0 = vpop.eup %417 }
 0x1d9   :  { %v420_v1 = vpop.eup %419  ;;  %v281_v2 = vadd.f32 1.0, %v418_v0 }
 0x1da   :  { %v422_v3 = vpop.eup %421  ;;  %v279_v4 = vadd.f32 1.0, %v420_v1 }
 0x1db   :  { %v424_v5 = vpop.eup %423  ;;  %v282_v6 = vadd.f32 1.0, %v422_v3  ;;  %v285_v8 = vmul.f32 %v281_v2, %v273_v57 }
 0x1dc   :  { %v280_v7 = vadd.f32 1.0, %v424_v5  ;;  %v283_v10 = vmul.f32 %v279_v4, %v271_v60 }
 0x1dd   :  { %v286_v9 = vmul.f32 %v282_v6, %v274_v62 }
 0x1de   :  { %v284_v11 = vmul.f32 %v280_v7, %v272_v63 }
 0x1df   :  { %v289_v12 = vpack.c.bf16 %v286_v9, %v285_v8 }
 0x1e0   :  { %v288_v13 = vpack.c.bf16 %v284_v11, %v283_v10 }
 0x1e2   :  { %394 = vmatpush3.bf16.msra.mxu0 %v288_v13 }
 0x1e3   :  { %395 = vmatprep.subr.bf16.mxu0 %v450_v47 }
 0x1e6   :  { %396 = vmatpush3.bf16.msra.mxu0 %v289_v12 }
 0x1e9   :  { %398 = vmatmul.mubr.msk.bf16.vlgmr.msra.gmra.mrb[4].mxu0 %vm215_vm2, %v287_v14 }
 0x2bc   :  { %v333_v16 = vpop.f32.mrb[4].mxu0 }
 0x2bd   :  { %v334_v17 = vadd.f32 %v333_v16, %v294_v15  ;;  %v399_v18 = vpop.f32.mrb[5].mxu0 }
 0x2be   :  { %v336_v19 = vpop.f32.mrb[6].mxu0 }
 0x2bf   :  { %v400_v20 = vpop.f32.mrb[7].mxu0  ;;  %340 = vst.msk [vmem:[#allocation2] sm:$0x3] %vm339_vm4, %v334_v17 }
 0x2c0   :  { %436 = shalt.err (!%p433_p4)
}
 0x2c1   :  { %s437_s10 = scalar_lea.hbm %s570_s7, 32 }
 0x2c2   :  { %p438_p5 = scmp.ne.s32.totalorder %s570_s7, %s437_s10  ;;  %p441_p6 = scmp.lt.u32.totalorder %s437_s10, %s570_s7 }
 0x2c4   :  { %p443_p7 = pnand %p441_p6, %p438_p5 }
 0x2c6   :  { %446 = shalt.err (!%p443_p7)
}
 0x2c7   :  { %350 = dma.vmem_to_hbm [thread:$0]  %s348_s30, 32, %s570_s7, [#allocation3]  }
 0x2c8   :  { %447 = dma.done.wait [#allocation3], 32  }
 0x2c9   :  { %448 = vsyncadd [#allocation3], 4294967264 }
 0x2ca   :  { %354 = vsyncpa [#allocation3], 1 }

</bundles_post_ra>
